<compile_context>
chip_gen: v7x
topology: tpu7x:2x2x1
jax: 0.10.0
libtpu: 0.0.40
codegen_flags: <defaults>
</compile_context>

<pallas_src>
import math
import functools

import jax
import jax.numpy as jnp
from jax.experimental import pallas as pl
from jax.experimental.pallas import tpu as pltpu

_LANE = 128      # last-dim vreg width
_SUBLANE = 8     # second-to-last vreg width (f32)


def _round_up(x, m):
    return ((x + m - 1) // m) * m


def _cdiv(a, b):
    return -(-a // b)


def _dqn_kernel(n_layers, *refs):
    """Fused MLP forward on one batch tile.

    refs = (x_ref, w0_ref, b0_ref, w1_ref, b1_ref, ..., out_ref)
    Hidden layers get ReLU; the final (output) layer is linear.
    """
    x_ref = refs[0]
    out_ref = refs[-1]
    param_refs = refs[1:-1]

    h = x_ref[...]                       # f32 activations
    for li in range(n_layers):
        w = param_refs[2 * li][...]
        b = param_refs[2 * li + 1][...]
        # Cast activations to the weight dtype: with bf16 weights this hits the
        # native bf16 MXU path; accumulation stays f32 via preferred_element_type.
        h = jnp.dot(h.astype(w.dtype), w, preferred_element_type=jnp.float32) + b
        if li < n_layers - 1:            # ReLU on hidden layers only
            h = jnp.maximum(h, 0.0)
    out_ref[...] = h.astype(out_ref.dtype)


def pad_dqn_params(params, param_dtype=jnp.float32):
    """Pad parameters ONCE, outside the per-step hot path.

    Hidden feature dims are zero-padded to lane multiples (128) so the
    intermediate matmuls run on dense MXU tiles.  The network input dim and
    the final output dim stay at their real (narrow) sizes: x is consumed
    as-is and the output store is a narrow vst.

    Args:
      params: list of (W, b) with W: [in, out] (transposed vs. PyTorch),
              b: [1, out] (or [out]).
      param_dtype: weight storage dtype (f32 or bf16; accumulation is f32).
    """
    n_layers = len(params)
    dims = [params[0][0].shape[0]] + [w.shape[1] for (w, _) in params]
    dims_p = [dims[0]] + [_round_up(d, _LANE) for d in dims[1:-1]] + [dims[-1]]

    padded = []
    for li, (w, b) in enumerate(params):
        di, do = w.shape
        di_p, do_p = dims_p[li], dims_p[li + 1]
        w_p = jnp.zeros((di_p, do_p), param_dtype).at[:di, :do].set(
            w.astype(param_dtype))
        b_p = jnp.zeros((1, do_p), jnp.float32).at[:, :do].set(
            jnp.reshape(b, (1, do)).astype(jnp.float32))
        padded.append((w_p, b_p))

    return {"padded": padded, "dims": dims, "dims_p": dims_p,
            "n_layers": n_layers}


def dqn_forward(x, prepared, *, tile_b=1024):
    """DQN forward pass as a single (batch-gridded) Pallas kernel.

    Args:
      x: [B, n_observations] float32.
      prepared: output of pad_dqn_params (padded params + dim metadata).
      tile_b: max batch-tile rows per grid step.
    Returns:
      [B, n_actions] float32 Q-values.
    """
    padded = prepared["padded"]
    dims = prepared["dims"]
    dims_p = prepared["dims_p"]
    n_layers = prepared["n_layers"]

    B, d_in = x.shape
    assert d_in == dims[0], (d_in, dims[0])
    n_actions = dims[-1]

    # ---- batch tiling: pad B to sublane multiple; force >=2 grid steps when
    # possible so the "parallel" axis can be split across v7x's two TCs.
    B_p = _round_up(B, _SUBLANE)
    n_tiles = _cdiv(B_p, tile_b)
    if B_p > _SUBLANE:
        n_tiles = max(n_tiles, 2)
    TILE_B = _round_up(_cdiv(B_p, n_tiles), _SUBLANE)
    B_p = TILE_B * n_tiles
    grid = (n_tiles,)

    x = x.astype(jnp.float32)
    if B_p != B:
        x_in = jnp.zeros((B_p, d_in), jnp.float32).at[:B].set(x)
    else:
        x_in = x

    # Input: narrow last dim (= full array dim, legal), batch-tiled.
    in_specs = [pl.BlockSpec((TILE_B, d_in), lambda i: (i, 0))]
    flat_inputs = [x_in]

    # Weights/biases: constant index -> VMEM-resident; single-buffered.
    for (w_p, b_p) in padded:
        flat_inputs += [w_p, b_p]
        in_specs += [
            pl.BlockSpec(w_p.shape, lambda i: (0, 0),
                         pipeline_mode=pl.Buffered(1)),
            pl.BlockSpec(b_p.shape, lambda i: (0, 0),
                         pipeline_mode=pl.Buffered(1)),
        ]

    # Output: real n_actions width (narrow, lane-masked store but ~32x less
    # HBM writeback than a 128-padded slab for n_actions=4).
    out_spec = pl.BlockSpec((TILE_B, n_actions), lambda i: (i, 0))

    # Advisory cost estimate from REAL dims (not padded).
    flops = 2 * B * sum(dims[i] * dims[i + 1] for i in range(n_layers))
    bytes_accessed = (
        B * d_in * 4
        + sum(int(w.size) * w.dtype.itemsize + int(b.size) * 4
              for (w, b) in padded)
        + B * n_actions * 4
    )
    cost = pl.CostEstimate(flops=flops, transcendentals=0,
                           bytes_accessed=bytes_accessed)

    # Rough per-tile VMEM footprint -> scoped limit with headroom.
    widest = max(dims_p)
    vmem_est = (2 * TILE_B * d_in * 4                           # x (2-buffered)
                + sum(int(w.size) * w.dtype.itemsize + int(b.size) * 4
                      for (w, b) in padded)                     # params (1-buf)
                + 2 * TILE_B * n_actions * 4                    # out (2-buffered)
                + 4 * TILE_B * widest * 4)                      # live activations
    vmem_limit = int(min(100 << 20, max(32 << 20, 2 * vmem_est)))

    kernel = functools.partial(_dqn_kernel, n_layers)

    out_p = pl.pallas_call(
        kernel,
        out_shape=jax.ShapeDtypeStruct((B_p, n_actions), jnp.float32),
        grid=grid,
        in_specs=in_specs,
        out_specs=out_spec,
        compiler_params=pltpu.CompilerParams(
            dimension_semantics=("parallel",),   # split batch across TCs
            vmem_limit_bytes=vmem_limit),
        cost_estimate=cost,
    )(*flat_inputs)

    if B_p != B:
        out_p = out_p[:B]
    return out_p


def init_dqn_params(key, n_observations, n_actions, hidden_layers=(32,)):
    """PyTorch-default-like init U(-1/sqrt(fan_in), +1/sqrt(fan_in)).

    Returns weights already transposed to [in, out] and biases as [1, out].
    """
    layer_dims = [n_observations] + list(hidden_layers) + [n_actions]
    params = []
    for i in range(len(layer_dims) - 1):
        fan_in, fan_out = layer_dims[i], layer_dims[i + 1]
        bound = 1.0 / math.sqrt(fan_in)
        key, kw, kb = jax.random.split(key, 3)
        w = jax.random.uniform(kw, (fan_in, fan_out), jnp.float32, -bound, bound)
        b = jax.random.uniform(kb, (1, fan_out), jnp.float32, -bound, bound)
        params.append((w, b))
    return params


def dqn_reference(x, params):
    """Pure-JAX reference for correctness checking."""
    h = x
    for li, (w, b) in enumerate(params):
        h = h @ w + b
        if li < len(params) - 1:
            h = jnp.maximum(h, 0.0)
    return h


if __name__ == "__main__":
    key = jax.random.PRNGKey(0)

    # Small shapes consistent with DQN(n_observations, n_actions, hidden_layers=[32])
    batch = 8
    n_observations = 16
    n_actions = 4
    hidden_layers = (32,)

    key, kx = jax.random.split(key)
    x = jax.random.normal(kx, (batch, n_observations), jnp.float32)
    params = init_dqn_params(key, n_observations, n_actions, hidden_layers)
    ref = dqn_reference(x, params)

    # Pad parameters ONCE (outside the hot path).
    prepared_f32 = pad_dqn_params(params, param_dtype=jnp.float32)

    # Small batch: single grid step, f32 params (bit-tight check).
    out = jax.block_until_ready(dqn_forward(x, prepared_f32))
    assert out.shape == (batch, n_actions), out.shape
    assert jnp.allclose(out, ref, atol=1e-5, rtol=1e-5), (
        f"max abs err = {jnp.max(jnp.abs(out - ref))}"
    )

    # Large batch (non-multiple of 8): exercises the >=2-step parallel batch
    # grid with VMEM-resident, single-buffered weights.
    key, kx2 = jax.random.split(key)
    x_big = jax.random.normal(kx2, (1030, n_observations), jnp.float32)
    out_big = jax.block_until_ready(dqn_forward(x_big, prepared_f32, tile_b=1024))
    ref_big = dqn_reference(x_big, params)
    assert out_big.shape == (1030, n_actions), out_big.shape
    assert jnp.allclose(out_big, ref_big, atol=1e-5, rtol=1e-5), (
        f"max abs err = {jnp.max(jnp.abs(out_big - ref_big))}"
    )

    # bf16 weights + bf16 activations (f32 accumulate): native bf16 MXU path,
    # looser tolerance.
    prepared_bf16 = pad_dqn_params(params, param_dtype=jnp.bfloat16)
    out_bf16 = jax.block_until_ready(dqn_forward(x, prepared_bf16))
    assert out_bf16.shape == (batch, n_actions), out_bf16.shape
    assert jnp.allclose(out_bf16, ref, atol=1e-1, rtol=1e-1), (
        f"max abs err (bf16) = {jnp.max(jnp.abs(out_bf16 - ref))}"
    )

    print("KERNEL_OK")
</pallas_src>

<mosaic_0001>
module attributes {stable_mosaic.version = 11 : i64} {
  func.func @_dqn_kernel(%arg0: i32, %arg1: memref<8x16xf32, #tpu.memory_space<vmem>>, %arg2: memref<16x128xf32, #tpu.memory_space<vmem>>, %arg3: memref<1x128xf32, #tpu.memory_space<vmem>>, %arg4: memref<128x4xf32, #tpu.memory_space<vmem>>, %arg5: memref<1x4xf32, #tpu.memory_space<vmem>>, %arg6: memref<8x4xf32, #tpu.memory_space<vmem>>) attributes {dimension_semantics = [#tpu.dimension_semantics<parallel>], iteration_bounds = array<i64: 1>, scalar_prefetch = 0 : i64, scratch_operands = 0 : i64, tpu.core_type = #tpu.core_type<tc>, window_params = [{transform_indices = @transform_0, window_bounds = array<i64: 8, 16>}, {pipeline_mode = #tpu.pipeline_mode<synchronous>, transform_indices = @transform_1, window_bounds = array<i64: 16, 128>}, {pipeline_mode = #tpu.pipeline_mode<synchronous>, transform_indices = @transform_2, window_bounds = array<i64: 1, 128>}, {pipeline_mode = #tpu.pipeline_mode<synchronous>, transform_indices = @transform_3, window_bounds = array<i64: 128, 4>}, {pipeline_mode = #tpu.pipeline_mode<synchronous>, transform_indices = @transform_4, window_bounds = array<i64: 1, 4>}, {transform_indices = @transform_5, window_bounds = array<i64: 8, 4>}]} {
    %c0 = arith.constant 0 : index
    %c0_0 = arith.constant 0 : index
    %0 = vector.load %arg1[%c0, %c0_0] : memref<8x16xf32, #tpu.memory_space<vmem>>, vector<8x16xf32>
    %c0_1 = arith.constant 0 : index
    %c0_2 = arith.constant 0 : index
    %1 = vector.load %arg2[%c0_1, %c0_2] : memref<16x128xf32, #tpu.memory_space<vmem>>, vector<16x128xf32>
    %c0_3 = arith.constant 0 : index
    %c0_4 = arith.constant 0 : index
    %2 = vector.load %arg3[%c0_3, %c0_4] : memref<1x128xf32, #tpu.memory_space<vmem>>, vector<1x128xf32>
    %cst = arith.constant dense<0.000000e+00> : vector<8x128xf32>
    %3 = tpu.matmul %0, %1, %cst {dimension_numbers = #tpu.dot_dimension_numbers<[1], [0], [0], [1], [0, 0, 1, 1], [], []>} : vector<8x16xf32>, vector<16x128xf32>, vector<8x128xf32> -> vector<8x128xf32>
    %4 = vector.broadcast %2 : vector<1x128xf32> to vector<8x128xf32>
    %5 = arith.addf %3, %4 : vector<8x128xf32>
    %cst_5 = arith.constant 0.000000e+00 : f32
    %6 = vector.broadcast %cst_5 : f32 to vector<8x128xf32>
    %7 = arith.maximumf %5, %6 : vector<8x128xf32>
    %c0_6 = arith.constant 0 : index
    %c0_7 = arith.constant 0 : index
    %8 = vector.load %arg4[%c0_6, %c0_7] : memref<128x4xf32, #tpu.memory_space<vmem>>, vector<128x4xf32>
    %c0_8 = arith.constant 0 : index
    %c0_9 = arith.constant 0 : index
    %9 = vector.load %arg5[%c0_8, %c0_9] : memref<1x4xf32, #tpu.memory_space<vmem>>, vector<1x4xf32>
    %cst_10 = arith.constant dense<0.000000e+00> : vector<8x4xf32>
    %10 = tpu.matmul %7, %8, %cst_10 {dimension_numbers = #tpu.dot_dimension_numbers<[1], [0], [0], [1], [0, 0, 1, 1], [], []>} : vector<8x128xf32>, vector<128x4xf32>, vector<8x4xf32> -> vector<8x4xf32>
    %11 = vector.broadcast %9 : vector<1x4xf32> to vector<8x4xf32>
    %12 = arith.addf %10, %11 : vector<8x4xf32>
    %c0_11 = arith.constant 0 : index
    %c0_12 = arith.constant 0 : index
    %13 = vector.load %arg6[%c0_11, %c0_12] : memref<8x4xf32, #tpu.memory_space<vmem>>, vector<8x4xf32>
    tpu.vector_store %arg6[%c0_11, %c0_12], %12 {strides = array<i32>} : memref<8x4xf32, #tpu.memory_space<vmem>>, vector<8x4xf32>,
    return
  }
  func.func @transform_0(%arg0: i32) -> (i32, i32) {
    %c0_i32 = arith.constant 0 : i32
    %c0_i32_0 = arith.constant 0 : i32
    return %arg0, %c0_i32 : i32, i32
  }
  func.func @transform_1(%arg0: i32) -> (i32, i32) {
    %c0_i32 = arith.constant 0 : i32
    %c0_i32_0 = arith.constant 0 : i32
    %c0_i32_1 = arith.constant 0 : i32
    return %c0_i32, %c0_i32_0 : i32, i32
  }
  func.func @transform_2(%arg0: i32) -> (i32, i32) {
    %c0_i32 = arith.constant 0 : i32
    %c0_i32_0 = arith.constant 0 : i32
    %c0_i32_1 = arith.constant 0 : i32
    return %c0_i32, %c0_i32_0 : i32, i32
  }
  func.func @transform_3(%arg0: i32) -> (i32, i32) {
    %c0_i32 = arith.constant 0 : i32
    %c0_i32_0 = arith.constant 0 : i32
    %c0_i32_1 = arith.constant 0 : i32
    return %c0_i32, %c0_i32_0 : i32, i32
  }
  func.func @transform_4(%arg0: i32) -> (i32, i32) {
    %c0_i32 = arith.constant 0 : i32
    %c0_i32_0 = arith.constant 0 : i32
    %c0_i32_1 = arith.constant 0 : i32
    return %c0_i32, %c0_i32_0 : i32, i32
  }
  func.func @transform_5(%arg0: i32) -> (i32, i32) {
    %c0_i32 = arith.constant 0 : i32
    %c0_i32_0 = arith.constant 0 : i32
    return %arg0, %c0_i32 : i32, i32
  }
}

</mosaic_0001>

<bundles_post_ra>
// kernel: tpu_custom_call.1
= control target key start
LH: loop header
LB: loop body
LE: loop exit
PB: predicated region body
PF: predicated region fallthrough
CT: control target
= control target key end

     0   :  { %v299_v0 = vmov 0.0|0.0   ;;  %vm300_vm0 = vmmov 0   ;;  %v301_v3 = vmov 0.0   ;;  %vm30_vm1 = vcmask 130048   ;;  %s398_s1 = inlined_call_operand.vmem [shape: f32[16,128], index: 1, kind: input, shape index: {}]   ;;  %s399_s3 = inlined_call_operand.vmem [shape: f32[128,4], index: 3, kind: input, shape index: {}]   ;;  %s400_s0 = inlined_call_operand.vmem [shape: f32[8,16], index: 0, kind: input, shape index: {}]   ;;  %s401_s2 = inlined_call_operand.vmem [shape: f32[1,128], index: 2, kind: input, shape index: {}]   ;;  %s402_s4 = inlined_call_operand.vmem [shape: f32[1,4], index: 4, kind: input, shape index: {}]   ;;  %s403_s5 = inlined_call_operand.vmem [shape: f32[8,4], index: 5, kind: output, shape index: {}]  }
   0x1   :  { %269 = vmatprep.subr.bf16.mxu0 %v299_v0  ;;  %v21_v1 = vld [vmem:[%s398_s1] sm:$0xff]  ;;  %v22_v2 = vld [vmem:[%s398_s1 + $0x8] sm:$0xff]  ;;  %231 = vmatprep.mubr.msk.f32.mxu0 %vm300_vm0, %v301_v3  ;;  %v107_v7 = vld [vmem:[%s399_s3 + $0x10] sm:$0xff]  ;;  %vm198_vm2 = vcmask 31744  }
   0x2   :  { %v270_v4 = vpack.c.bf16 %v22_v2, %v21_v1  ;;  %272 = vmatprep.subr.bf16.mxu1 %v299_v0  ;;  %v105_v5 = vld [vmem:[%s399_s3] sm:$0xff]  ;;  %v106_v6 = vld [vmem:[%s399_s3 + $0x8] sm:$0xff]  ;;  %266 = vmatprep.mubr.msk.f32.mxu1 %vm300_vm0, %v301_v3  ;;  %v108_v9 = vld [vmem:[%s399_s3 + $0x18] sm:$0xff] }
   0x3   :  { %v273_v8 = vpack.c.bf16 %v106_v6, %v105_v5  ;;  %v20_v10 = vld [vmem:[%s400_s0] sm:$0xff]  ;;  %v276_v11 = vpack.c.bf16 %v108_v9, %v107_v7  ;;  %v110_v13 = vld [vmem:[%s399_s3 + $0x28] sm:$0xff]  ;;  %v111_v15 = vld [vmem:[%s399_s3 + $0x30] sm:$0xff] }
   0x4   :  { %271 = vmatpush3.bf16.msra.mxu0 %v270_v4  ;;  %v109_v12 = vld [vmem:[%s399_s3 + $0x20] sm:$0xff]  ;;  %v112_v16 = vld [vmem:[%s399_s3 + $0x38] sm:$0xff]  ;;  %v114_v19 = vld [vmem:[%s399_s3 + $0x48] sm:$0xff] }
   0x5   :  { %274 = vmatpush3.bf16.msra.mxu1 %v273_v8  ;;  %v279_v14 = vpack.c.bf16 %v110_v13, %v109_v12  ;;  %v282_v17 = vpack.c.bf16 %v112_v16, %v111_v15  ;;  %v113_v18 = vld [vmem:[%s399_s3 + $0x40] sm:$0xff]  ;;  %v115_v21 = vld [vmem:[%s399_s3 + $0x50] sm:$0xff]  ;;  %v116_v22 = vld [vmem:[%s399_s3 + $0x58] sm:$0xff] }
   0x6   :  { %275 = vmatprep.subr.bf16.mxu1 %v299_v0  ;;  %v285_v20 = vpack.c.bf16 %v114_v19, %v113_v18  ;;  %v288_v23 = vpack.c.bf16 %v116_v22, %v115_v21  ;;  %v117_v24 = vld [vmem:[%s399_s3 + $0x60] sm:$0xff]  ;;  %v118_v25 = vld [vmem:[%s399_s3 + $0x68] sm:$0xff]  ;;  %v119_v27 = vld [vmem:[%s399_s3 + $0x70] sm:$0xff] }
   0x7   :  { %232 = vmatmul.mubr.msk.f32.vlgmr.msra.gmra.mrb[0].mxu0 %vm30_vm1, %v20_v10  ;;  %v291_v26 = vpack.c.bf16 %v118_v25, %v117_v24  ;;  %v120_v28 = vld [vmem:[%s399_s3 + $0x78] sm:$0xff]  ;;  %v204_v30 = vld [vmem:[%s401_s2] ss:$0 sm:$0xff] }
   0x8   :  { %v294_v29 = vpack.c.bf16 %v120_v28, %v119_v27  ;;  %v206_v35 = vld [vmem:[%s402_s4] ss:$0 sm:$0xff] }
   0x9   :  { %277 = vmatpush3.bf16.msra.mxu1 %v276_v11 }
   0xa   :  { %278 = vmatprep.subr.bf16.mxu1 %v299_v0 }
   0xd   :  { %280 = vmatpush3.bf16.msra.mxu1 %v279_v14 }
   0xe   :  { %281 = vmatprep.subr.bf16.mxu1 %v299_v0 }
  0x11   :  { %283 = vmatpush3.bf16.msra.mxu1 %v282_v17 }
  0x12   :  { %284 = vmatprep.subr.bf16.mxu1 %v299_v0 }
  0x15   :  { %286 = vmatpush3.bf16.msra.mxu1 %v285_v20 }
  0x16   :  { %287 = vmatprep.subr.bf16.mxu1 %v299_v0 }
  0x19   :  { %289 = vmatpush3.bf16.msra.mxu1 %v288_v23 }
  0x1a   :  { %290 = vmatprep.subr.bf16.mxu1 %v299_v0 }
  0x1d   :  { %292 = vmatpush3.bf16.msra.mxu1 %v291_v26 }
  0x1e   :  { %293 = vmatprep.subr.bf16.mxu1 %v299_v0 }
  0x21   :  { %295 = vmatpush3.bf16.msra.mxu1 %v294_v29 }
  0xda   :  { %v100_v31 = vpop.f32.mrb[0].mxu0 }
  0xdb   :  { %v101_v32 = vadd.f32 %v204_v30, %v100_v31  ;;  %v233_v33 = vpop.f32.mrb[1].mxu0 }
  0xdd   :  { %v104_v34 = vmax.f32 %v101_v32, 0.0 }
  0xdf   :  { %267 = vmatmul.mubr.f32.vlgmr.msra.gmra.mrb[0].mxu1 %v104_v34 }
 0x1b2   :  { %v194_v36 = vpop.f32.mrb[0].mxu1 }
 0x1b3   :  { %v195_v37 = vadd.f32 %v206_v35, %v194_v36  ;;  %v268_v38 = vpop.f32.mrb[1].mxu1 }
 0x1b5   :  { %199 = vst.msk [vmem:[%s403_s5] sm:$0xff] %vm198_vm2, %v195_v37 }

</bundles_post_ra>
